<compile_context>
chip_gen: v5e
topology: v5e:2x2
jax: 0.10.0
libtpu: 0.0.40
codegen_flags: <defaults>
</compile_context>

<pallas_src>
import functools
import math

import jax
import jax.numpy as jnp
from jax.experimental import pallas as pl
from jax.experimental.pallas import tpu as pltpu


def _pe_kernel(s0_ref, c0_ref, w_ref, o_ref, *, pos_per_tile):
    """One output tile of the positional-encoding table.

    s0_ref, c0_ref: (Rt, L) base tables for relative positions [0, pos_per_tile)
    w_ref:          (1, L)  per-column angular frequency
    o_ref:          (Rt, L) output tile covering positions [t0, t0+pos_per_tile)
    """
    t0 = (pl.program_id(0) * pos_per_tile).astype(jnp.float32)
    shift = t0 * w_ref[...]                    # (1, L): 2*L transcendentals/step
    o_ref[...] = (s0_ref[...] * jnp.cos(shift)
                  + c0_ref[...] * jnp.sin(shift)).astype(o_ref.dtype)


def _pick_rows(total_rows: int, row_bytes: int) -> int:
    """Rows per output tile: whole array when tiny, else a multiple of 8 sized
    from a ~2 MiB/buffer VMEM budget (v7x-safe), keeping >=2 grid steps so the
    parallel grid axis can shard across v7x's two TensorCores."""
    if total_rows <= 8:
        return total_rows
    budget = 2 * 1024 * 1024
    max_rows = max(8, (budget // row_bytes) // 8 * 8)
    half = (((total_rows + 1) // 2) + 7) // 8 * 8     # ceil(total/2), 8-aligned
    return max(8, min(max_rows, half))


def positional_embeddings(x: jax.Array, *, out_dtype=jnp.float32) -> jax.Array:
    """Equivalent of PositionalEmbeddings(input_dim=D).forward(x) for x:(B,T,D)."""
    B, T, D = x.shape
    assert D % 2 == 0, "PositionalEmbeddings requires an even feature dim"

    # Output layout: lane-dense flattened ((T*D)//128, 128) when D < 128
    # (unmasked full-lane stores), otherwise plain (T, D).
    use_flat = (D < 128) and (128 % D == 0) and ((T * D) % 128 == 0)
    if use_flat:
        L, R = 128, (T * D) // 128
    else:
        L, R = D, T

    Rt = _pick_rows(R, L * 4)
    pos_per_tile = (Rt * L) // D               # sequence positions per tile
    grid_steps = pl.cdiv(R, Rt)

    # ---- base tables for one tile's worth of positions (tiny, built once).
    pos = jnp.arange(pos_per_tile, dtype=jnp.float32)[:, None]         # (P, 1)
    div_term = jnp.exp(jnp.arange(0, D, 2, dtype=jnp.float32)
                       * (-(math.log(10000.0) / D)))                   # (D/2,)
    ang = pos * div_term[None, :]                                      # (P, D/2)
    s, c = jnp.sin(ang), jnp.cos(ang)
    s0 = jnp.stack([s, c], axis=-1).reshape(pos_per_tile, D)           # base PE
    c0 = jnp.stack([c, -s], axis=-1).reshape(pos_per_tile, D)          # quadrature
    w = jnp.repeat(div_term, 2)                                        # (D,)
    if use_flat:
        s0 = s0.reshape(Rt, L)                                         # contiguous
        c0 = c0.reshape(Rt, L)
        w_row = jnp.tile(w, L // D)[None, :]                           # (1, 128)
    else:
        w_row = w[None, :]                                             # (1, D)

    out_itemsize = jnp.dtype(out_dtype).itemsize
    cost = pl.CostEstimate(
        flops=3 * R * L,
        transcendentals=2 * L * grid_steps,
        bytes_accessed=R * L * out_itemsize + (2 * Rt * L + L) * 4,
    )

    pe = pl.pallas_call(
        functools.partial(_pe_kernel, pos_per_tile=pos_per_tile),
        out_shape=jax.ShapeDtypeStruct((R, L), out_dtype),
        grid=(grid_steps,),
        in_specs=[
            pl.BlockSpec((Rt, L), lambda t: (0, 0)),   # S0: resident, fetched once
            pl.BlockSpec((Rt, L), lambda t: (0, 0)),   # C0: resident, fetched once
            pl.BlockSpec((1, L), lambda t: (0, 0)),    # frequency row
        ],
        out_specs=pl.BlockSpec((Rt, L), lambda t: (t, 0)),
        compiler_params=pltpu.CompilerParams(
            dimension_semantics=("parallel",)),
        cost_estimate=cost,
    )(s0, c0, w_row)

    if use_flat:
        pe = pe.reshape(T, D)                  # contiguous -> metadata-only

    # PyTorch .repeat(B, 1, 1): zero-copy broadcast inside jit; a downstream
    # `x + pe` fuses with it so the saved HBM traffic is not paid back.
    return jnp.broadcast_to(pe[None], (B, T, D))


def _reference(x: jax.Array) -> jax.Array:
    """Pure-JAX reference mirroring the PyTorch buffer construction."""
    B, T, D = x.shape
    position = jnp.arange(T, dtype=jnp.float32)[:, None]               # (T, 1)
    div_term = jnp.exp(jnp.arange(0, D, 2, dtype=jnp.float32)
                       * (-(math.log(10000.0) / D)))                   # (D/2,)
    pe = jnp.zeros((T, D), jnp.float32)
    pe = pe.at[:, 0::2].set(jnp.sin(position * div_term))
    pe = pe.at[:, 1::2].set(jnp.cos(position * div_term))
    return jnp.broadcast_to(pe[None], (B, T, D))


if __name__ == "__main__":
    key = jax.random.PRNGKey(0)
    B, T, D = 2, 8, 32
    x = jax.random.normal(key, (B, T, D), dtype=jnp.float32)

    out = jax.block_until_ready(positional_embeddings(x))
    ref = jax.block_until_ready(_reference(x))

    assert out.shape == (B, T, D), out.shape
    assert out.dtype == jnp.float32
    assert jnp.allclose(out, ref, atol=1e-5, rtol=1e-5), "mismatch vs reference"

    print("KERNEL_OK")
</pallas_src>

<mosaic_0001>
module attributes {stable_mosaic.version = 11 : i64} {
  func.func @_pe_kernel(%arg0: i32, %arg1: memref<2x128xf32, #tpu.memory_space<vmem>>, %arg2: memref<2x128xf32, #tpu.memory_space<vmem>>, %arg3: memref<1x128xf32, #tpu.memory_space<vmem>>, %arg4: memref<2x128xf32, #tpu.memory_space<vmem>>) attributes {dimension_semantics = [#tpu.dimension_semantics<parallel>], iteration_bounds = array<i64: 1>, scalar_prefetch = 0 : i64, scratch_operands = 0 : i64, tpu.core_type = #tpu.core_type<tc>, window_params = [{pipeline_mode = #tpu.pipeline_mode<synchronous>, transform_indices = @transform_0, window_bounds = array<i64: 2, 128>}, {pipeline_mode = #tpu.pipeline_mode<synchronous>, transform_indices = @transform_1, window_bounds = array<i64: 2, 128>}, {pipeline_mode = #tpu.pipeline_mode<synchronous>, transform_indices = @transform_2, window_bounds = array<i64: 1, 128>}, {transform_indices = @transform_3, window_bounds = array<i64: 2, 128>}]} {
    %c8_i32 = arith.constant 8 : i32
    %0 = arith.muli %arg0, %c8_i32 : i32
    %1 = arith.sitofp %0 : i32 to f32
    %c0 = arith.constant 0 : index
    %c0_0 = arith.constant 0 : index
    %2 = vector.load %arg3[%c0, %c0_0] : memref<1x128xf32, #tpu.memory_space<vmem>>, vector<1x128xf32>
    %3 = vector.broadcast %1 : f32 to vector<1x128xf32>
    %4 = arith.mulf %3, %2 : vector<1x128xf32>
    %c0_1 = arith.constant 0 : index
    %c0_2 = arith.constant 0 : index
    %5 = vector.load %arg1[%c0_1, %c0_2] : memref<2x128xf32, #tpu.memory_space<vmem>>, vector<2x128xf32>
    %6 = math.cos %4 : vector<1x128xf32>
    %7 = vector.broadcast %6 : vector<1x128xf32> to vector<2x128xf32>
    %8 = arith.mulf %5, %7 : vector<2x128xf32>
    %c0_3 = arith.constant 0 : index
    %c0_4 = arith.constant 0 : index
    %9 = vector.load %arg2[%c0_3, %c0_4] : memref<2x128xf32, #tpu.memory_space<vmem>>, vector<2x128xf32>
    %10 = math.sin %4 : vector<1x128xf32>
    %11 = vector.broadcast %10 : vector<1x128xf32> to vector<2x128xf32>
    %12 = arith.mulf %9, %11 : vector<2x128xf32>
    %13 = arith.addf %8, %12 : vector<2x128xf32>
    %c0_5 = arith.constant 0 : index
    %c0_6 = arith.constant 0 : index
    %14 = vector.load %arg4[%c0_5, %c0_6] : memref<2x128xf32, #tpu.memory_space<vmem>>, vector<2x128xf32>
    tpu.vector_store %arg4[%c0_5, %c0_6], %13 {strides = array<i32>} : memref<2x128xf32, #tpu.memory_space<vmem>>, vector<2x128xf32>,
    return
  }
  func.func @transform_0(%arg0: i32) -> (i32, i32) {
    %c0_i32 = arith.constant 0 : i32
    %c0_i32_0 = arith.constant 0 : i32
    %c0_i32_1 = arith.constant 0 : i32
    return %c0_i32, %c0_i32_0 : i32, i32
  }
  func.func @transform_1(%arg0: i32) -> (i32, i32) {
    %c0_i32 = arith.constant 0 : i32
    %c0_i32_0 = arith.constant 0 : i32
    %c0_i32_1 = arith.constant 0 : i32
    return %c0_i32, %c0_i32_0 : i32, i32
  }
  func.func @transform_2(%arg0: i32) -> (i32, i32) {
    %c0_i32 = arith.constant 0 : i32
    %c0_i32_0 = arith.constant 0 : i32
    %c0_i32_1 = arith.constant 0 : i32
    return %c0_i32, %c0_i32_0 : i32, i32
  }
  func.func @transform_3(%arg0: i32) -> (i32, i32) {
    %c0_i32 = arith.constant 0 : i32
    %c0_i32_0 = arith.constant 0 : i32
    return %arg0, %c0_i32 : i32, i32
  }
}

</mosaic_0001>

<bundles_post_ra>
// kernel: tpu_custom_call.1
= control target key start
LH: loop header
LB: loop body
LE: loop exit
PB: predicated region body
PF: predicated region fallthrough
CT: control target
= control target key end

     0   :  { %8 = vsyncpa [#allocation3], 0  ;;  %s569_s0 = inlined_call_operand.hbm [shape: f32[2,128], index: 0, kind: input, shape index: {}]   ;;  %s570_s1 = inlined_call_operand.hbm [shape: f32[2,128], index: 1, kind: input, shape index: {}]   ;;  %s571_s2 = inlined_call_operand.vmem [shape: f32[1,128], index: 2, kind: input, shape index: {}]   ;;  %s572_s3 = inlined_call_operand.hbm [shape: f32[2,128], index: 3, kind: output, shape index: {}]  }
   0x1   :  { %9 = vsyncpa [#allocation6], 0 }
   0x2   :  { %10 = vsyncpa [#allocation4], 0  ;;  %s16_s14 = sshll.u32 %s569_s0, 4  ;;  %s481_s15 = smov [#allocation2]   ;;  %s17_s14 = int_to_ptr.hbm [resolvable:$true] %s16_s14 }
   0x3   :  { %s18_s16 = sshll.u32 %s481_s15, 4  ;;  %s27_s19 = sshll.u32 %s570_s1, 4  ;;  %s19_s16 = int_to_ptr.vmem [resolvable:$true] %s18_s16  ;;  %s28_s19 = int_to_ptr.hbm [resolvable:$true] %s27_s19 }
   0x4   :  { %21 = dma.hbm_to_vmem [thread:$0]  %s17_s14, 32, %s19_s16, [#allocation3]  }
   0x5   :  { %s482_s20 = smov [#allocation5]  }
   0x6   :  { %s29_s21 = sshll.u32 %s482_s20, 4  ;;  %s30_s21 = int_to_ptr.vmem [resolvable:$true] %s29_s21 }
   0x7   :  { %32 = dma.hbm_to_vmem [thread:$0]  %s28_s19, 32, %s30_s21, [#allocation6]  }
   0x8   :  { %475 = dma.done.wait [#allocation3], 32  }
   0x9   :  { %476 = vsyncadd [#allocation3], 4294967264 }
   0xa   :  { %477 = dma.done.wait [#allocation6], 32  }
   0xb   :  { %478 = vsyncadd [#allocation6], 4294967264  ;;  %v45_v0 = vld [vmem:[%s571_s2] sm:$0x1]  ;;  %v483_v13 = vmov 683565275  }
   0xc   :  { %v520_v1 = vmul.f32 0.0, %v45_v0  ;;  %v484_v15 = vmov 2475754826   ;;  %v485_v17 = vmov 2131351028   ;;  %s490_s1 = smov [#allocation7]  }
   0xd   :  { %v486_v19 = vmov 2102212464   ;;  %v487_v21 = vmov 920167782   ;;  %v488_v27 = vmov 1326507024  }
   0xe   :  { %v52_v2 = vand.u32 2139095040, %v520_v1  ;;  %v49_v4 = vand.u32 2147483647, %v520_v1  ;;  %vm51_vm12 = vcmp.lt.s32.totalorder %v520_v1, 0  ;;  %s374_s2 = sshll.u32 %s490_s1, 4  ;;  %s376_s25 = sshll.u32 %s572_s3, 4  ;;  %s375_s2 = int_to_ptr.vmem [resolvable:$true] %s374_s2  ;;  %s377_s25 = int_to_ptr.hbm [resolvable:$true] %s376_s25 }
  0x10   :  { %v53_v3 = vshrl.u32 %v52_v2, 23  ;;  %v56_v7 = vand.u32 8388607, %v49_v4  ;;  %v489_v2 = vmov 0   ;;  %vm50_vm13 = vcmp.le.f32.partialorder %v49_v4, 0.7853982 }
  0x12   :  { %v387_v5 = vadd.s32 4294967169, %v53_v3  ;;  %v57_v10 = vor.u32 8388608, %v56_v7 }
  0x14   :  { %v59_v6 = vadd.s32 1, %v387_v5  ;;  %v529_v29 = vshll.u32 %v57_v10, 8 }
  0x16   :  { %vm60_vm0 = vcmp.gt.s32.totalorder %v59_v6, 0  ;;  %v98_v41 = vand.u32 65535, %v529_v29  ;;  %v99_v42 = vshrl.u32 %v529_v29, 16 }
  0x17   :  { %v61_v8 = vsel %vm60_vm0, %v59_v6, 0 }
  0x18   :  { %v63_v9 = vand.u32 31, %v61_v8  ;;  %v526_v11 = vshrl.u32 %v61_v8, 5 }
  0x1a   :  { %v64_v12 = vsub.s32 32, %v63_v9  ;;  %v66_v14 = vshll.u32 %v483_v13, %v63_v9  ;;  %v69_v16 = vshll.u32 %v484_v15, %v63_v9  ;;  %v72_v18 = vshll.u32 %v485_v17, %v63_v9 }
  0x1b   :  { %v75_v20 = vshll.u32 %v486_v19, %v63_v9  ;;  %v78_v22 = vshll.u32 %v487_v21, %v63_v9  ;;  %vm81_vm1 = vcmp.lt.s32.totalorder %v526_v11, 1  ;;  %vm84_vm2 = vcmp.lt.s32.totalorder %v526_v11, 4 }
  0x1c   :  { %v67_v23 = vshrl.u32 %v484_v15, %v64_v12  ;;  %v70_v24 = vshrl.u32 %v485_v17, %v64_v12  ;;  %v73_v25 = vshrl.u32 %v486_v19, %v64_v12  ;;  %v76_v26 = vshrl.u32 %v487_v21, %v64_v12 }
  0x1d   :  { %v79_v28 = vshrl.u32 %v488_v27, %v64_v12  ;;  %vm83_vm3 = vcmp.lt.s32.totalorder %v526_v11, 3  ;;  %vm82_vm4 = vcmp.lt.s32.totalorder %v526_v11, 2  ;;  %v65_v49 = vshrl.u32 %v483_v13, %v64_v12 }
  0x1e   :  { %v68_v30 = vor.u32 %v67_v23, %v66_v14  ;;  %v71_v31 = vor.u32 %v70_v24, %v69_v16  ;;  %v74_v32 = vor.u32 %v73_v25, %v72_v18  ;;  %v77_v33 = vor.u32 %v76_v26, %v75_v20 }
  0x1f   :  { %v80_v34 = vor.u32 %v79_v28, %v78_v22 }
  0x20   :  { %v89_v35 = vsel %vm81_vm1, %v68_v30, %v71_v31  ;;  %v93_v36 = vsel %vm81_vm1, %v71_v31, %v74_v32  ;;  %v90_v37 = vsel %vm84_vm2, %v77_v33, 920167782  ;;  %v85_v62 = vsel %vm81_vm1, %v65_v49, %v68_v30 }
  0x21   :  { %v94_v38 = vsel %vm84_vm2, %v80_v34, 1326507024  ;;  %v91_v39 = vsel %vm83_vm3, %v74_v32, %v90_v37  ;;  %v86_v0 = vsel %vm84_vm2, %v74_v32, 2102212464 }
  0x22   :  { %v95_v40 = vsel %vm83_vm3, %v77_v33, %v94_v38  ;;  %v92_v43 = vsel %vm82_vm4, %v89_v35, %v91_v39  ;;  %v87_v13 = vsel %vm83_vm3, %v71_v31, %v86_v0 }
  0x23   :  { %v96_v44 = vsel %vm82_vm4, %v93_v36, %v95_v40  ;;  %v122_v47 = vand.u32 65535, %v92_v43  ;;  %v123_v48 = vshrl.u32 %v92_v43, 16  ;;  %v88_v21 = vsel %vm82_vm4, %v85_v62, %v87_v13 }
  0x24   :  { %v100_v45 = vand.u32 65535, %v96_v44  ;;  %v101_v46 = vshrl.u32 %v96_v44, 16  ;;  %v142_v25 = vmul.u32 %v529_v29, %v88_v21  ;;  %vm192_vm4 = vweird.f32 %v520_v1 }
  0x25   :  { %v124_v53 = vmul.u32 %v122_v47, %v98_v41  ;;  %v125_v54 = vmul.u32 %v123_v48, %v98_v41  ;;  %v126_v55 = vmul.u32 %v122_v47, %v99_v42  ;;  %v127_v59 = vmul.u32 %v123_v48, %v99_v42 }
  0x26   :  { %v102_v50 = vmul.u32 %v100_v45, %v98_v41  ;;  %v103_v51 = vmul.u32 %v101_v46, %v98_v41  ;;  %v104_v52 = vmul.u32 %v100_v45, %v99_v42  ;;  %v105_v56 = vmul.u32 %v101_v46, %v99_v42 }
  0x27   :  { %v128_v60 = vshll.u32 %v125_v54, 16  ;;  %v130_v61 = vshll.u32 %v126_v55, 16  ;;  %v129_v10 = vshrl.u32 %v125_v54, 16  ;;  %v131_v17 = vshrl.u32 %v126_v55, 16 }
  0x28   :  { %v106_v57 = vshll.u32 %v103_v51, 16  ;;  %v108_v58 = vshll.u32 %v104_v52, 16  ;;  %v107_v6 = vshrl.u32 %v103_v51, 16  ;;  %v109_v14 = vshrl.u32 %v104_v52, 16 }
  0x29   :  { %vm132_vm6 = vc.u32 %v124_v53, %v128_v60  ;;  %v134_v5 = vadd.s32 %v128_v60, %v124_v53 }
  0x2a   :  { %vm110_vm5 = vc.u32 %v102_v50, %v106_v57  ;;  %v112_v63 = vadd.s32 %v106_v57, %v102_v50  ;;  %v133_v8 = vsel %vm132_vm6, 1, %v489_v2 }
  0x2b   :  { %v111_v3 = vsel %vm110_vm5, 1, %v489_v2  ;;  %v135_v12 = vadd.s32 %v133_v8, %v127_v59  ;;  %vm136_vm8 = vc.u32 %v134_v5, %v130_v61  ;;  %v138_v20 = vadd.s32 %v134_v5, %v130_v61 }
  0x2c   :  { %v113_v7 = vadd.s32 %v111_v3, %v105_v56  ;;  %vm114_vm7 = vc.u32 %v112_v63, %v108_v58  ;;  %v137_v16 = vsel %vm136_vm8, 1, %v489_v2 }
  0x2d   :  { %v115_v9 = vsel %vm114_vm7, 1, %v489_v2  ;;  %v139_v18 = vadd.s32 %v137_v16, %v135_v12 }
  0x2e   :  { %v117_v15 = vadd.s32 %v115_v9, %v113_v7 }
  0x2f   :  { %v140_v22 = vadd.s32 %v139_v18, %v129_v10  ;;  %v48_v18 = vld [vmem:[#allocation2] sm:$0x3] }
  0x30   :  { %v118_v19 = vadd.s32 %v117_v15, %v107_v6 }
  0x31   :  { %v141_v24 = vadd.s32 %v140_v22, %v131_v17 }
  0x32   :  { %v119_v23 = vadd.s32 %v118_v19, %v109_v14 }
  0x33   :  { %v145_v26 = vadd.s32 1, %v141_v24 }
  0x34   :  { %vm144_vm9 = vc.u32 %v119_v23, %v138_v20  ;;  %v143_v11 = vadd.s32 %v138_v20, %v119_v23  ;;  %v207_v20 = vld [vmem:[#allocation5] sm:$0x3] }
  0x35   :  { %v146_v27 = vsel %vm144_vm9, %v145_v26, %v141_v24 }
  0x36   :  { %v147_v28 = vadd.s32 %v146_v27, %v142_v25 }
  0x38   :  { %v148_v30 = vadd.s32 536870912, %v147_v28 }
  0x3a   :  { %v149_v31 = vshrl.u32 %v148_v30, 30 }
  0x3c   :  { %v150_v32 = vshll.u32 %v149_v31, 30  ;;  %v173_v49 = vsub.s32 4, %v149_v31 }
  0x3e   :  { %v151_v33 = vsub.s32 %v147_v28, %v150_v32  ;;  %v174_v52 = vsel %vm51_vm12, %v173_v49, %v149_v31 }
  0x3f   :  { %v176_v55 = vsel %vm50_vm13, 0, %v174_v52 }
  0x40   :  { %vm152_vm10 = vcmp.lt.s32.totalorder %v151_v33, 0  ;;  %v153_v34 = vsub.s32 0, %v151_v33  ;;  %v352_v60 = vadd.s32 3, %v176_v55  ;;  %v193_v2 = vand.u32 3, %v176_v55 }
  0x42   :  { %v154_v35 = vsel %vm152_vm10, %v153_v34, %v151_v33  ;;  %v353_v3 = vand.u32 3, %v352_v60  ;;  %vm198_vm14 = vcmp.eq.s32.totalorder %v193_v2, 2  ;;  %vm194_vm0 = vcmp.lt.s32.totalorder %v193_v2, 2 }
  0x43   :  { %v155_v36 = vclz %v154_v35  ;;  %vm195_vm1 = vcmp.eq.s32.totalorder %v193_v2, 0 }
  0x44   :  { %vm358_vm15 = vcmp.eq.s32.totalorder %v353_v3, 2  ;;  %vm355_vm2 = vcmp.eq.s32.totalorder %v353_v3, 0  ;;  %vm354_vm3 = vcmp.lt.s32.totalorder %v353_v3, 2 }
  0x45   :  { %v388_v37 = vadd.s32 4294967294, %v155_v36 }
  0x47   :  { %vm389_vm11 = vcmp.lt.s32.totalorder %v388_v37, 0 }
  0x48   :  { %v158_v38 = vsel %vm389_vm11, 0, %v388_v37 }
  0x49   :  { %v159_v39 = vsub.s32 32, %v158_v38  ;;  %v160_v40 = vshll.u32 %v151_v33, %v158_v38  ;;  %v163_v41 = vsub.s32 4294967266, %v158_v38 }
  0x4b   :  { %v161_v29 = vshrl.u32 %v143_v11, %v159_v39  ;;  %v164_v42 = vadd.s32 127, %v163_v41 }
  0x4d   :  { %v162_v43 = vor.u32 %v161_v29, %v160_v40  ;;  %v165_v44 = vshll.u32 %v164_v42, 23 }
  0x4f   :  { %v166_v45 = vor.u32 4788187, %v165_v44  ;;  %v169_v46 = vcvt.s32.f32 %v162_v43 }
  0x51   :  { %v167_v47 = vand.u32 2147483647, %v166_v45 }
  0x53   :  { %v170_v48 = vmul.f32 %v169_v46, %v167_v47 }
  0x55   :  { %v171_v50 = vxor.u32 2147483648, %v170_v48 }
  0x57   :  { %v172_v51 = vsel %vm51_vm12, %v171_v50, %v170_v48 }
  0x58   :  { %v175_v53 = vsel %vm50_vm13, %v520_v1, %v172_v51 }
  0x59   :  { %v177_v54 = vmul.f32 %v175_v53, %v175_v53 }
  0x5b   :  { %v178_v56 = vmul.f32 -0.001358992, %v177_v54  ;;  %v185_v57 = vmul.f32 -0.00019511016, %v177_v54 }
  0x5d   :  { %v179_v58 = vadd.f32 0.041655596, %v178_v56  ;;  %v186_v59 = vadd.f32 0.008332121, %v185_v57 }
  0x5f   :  { %v180_v61 = vmul.f32 %v179_v58, %v177_v54  ;;  %v187_v62 = vmul.f32 %v186_v59, %v177_v54 }
  0x61   :  { %v181_v63 = vadd.f32 -0.4999988, %v180_v61  ;;  %v188_v0 = vadd.f32 -0.16666654, %v187_v62 }
  0x63   :  { %v182_v5 = vmul.f32 %v181_v63, %v177_v54  ;;  %v189_v4 = vmul.f32 %v188_v0, %v177_v54 }
  0x65   :  { %v183_v6 = vadd.f32 1.0, %v182_v5  ;;  %v190_v7 = vadd.f32 1.0, %v189_v4 }
  0x67   :  { %v191_v8 = vmul.f32 %v190_v7, %v175_v53  ;;  %v199_v9 = vxor.u32 2147483648, %v183_v6 }
  0x69   :  { %v196_v10 = vxor.u32 2147483648, %v191_v8  ;;  %v200_v12 = vsel %vm198_vm14, %v199_v9, %v191_v8  ;;  %v360_v13 = vsel %vm358_vm15, %v199_v9, %v191_v8 }
  0x6b   :  { %v197_v14 = vsel %vm195_vm1, %v183_v6, %v196_v10  ;;  %v357_v15 = vsel %vm355_vm2, %v183_v6, %v196_v10 }
  0x6c   :  { %v201_v16 = vsel %vm194_vm0, %v197_v14, %v200_v12  ;;  %v361_v17 = vsel %vm354_vm3, %v357_v15, %v360_v13 }
  0x6d   :  { %v202_v19 = vsel %vm192_vm4, nan, %v201_v16  ;;  %v362_v21 = vsel %vm192_vm4, nan, %v361_v17 }
  0x6e   :  { %v204_v22 = vperm.slane %v202_v19, 0  ;;  %v364_v23 = vperm.slane %v362_v21, 0 }
  0x70   :  { %v206_v24 = vmul.f32 %v204_v22, %v48_v18  ;;  %v366_v25 = vmul.f32 %v364_v23, %v207_v20 }
  0x72   :  { %v367_v26 = vadd.f32 %v366_v25, %v206_v24 }
  0x74   :  { %368 = vst [vmem:[#allocation7] sm:$0x3] %v367_v26 }
  0x75   :  { %379 = dma.vmem_to_hbm [thread:$0]  %s375_s2, 32, %s377_s25, [#allocation4]  }
  0x76   :  { %479 = dma.done.wait [#allocation4], 32  }
  0x77   :  { %480 = vsyncadd [#allocation4], 4294967264 }
  0x78   :  { %384 = vsyncpa [#allocation3], 1 }
  0x79   :  { %385 = vsyncpa [#allocation6], 1 }
  0x7a   :  { %386 = vsyncpa [#allocation4], 1 }

</bundles_post_ra>
